<compile_context>
chip_gen: v6e
topology: v6e:2x2x1
jax: 0.10.0
libtpu: 0.0.40
codegen_flags: <defaults>
</compile_context>

<pallas_src>
import math

import jax
import jax.numpy as jnp
from jax.experimental import pallas as pl
from jax.experimental.pallas import tpu as pltpu


def _token_embedding_kernel(x_ref, w_ref, o_ref):
    # x_ref: [1, L, C] (one batch element) | w_ref: [3, C, D] (resident) | o_ref: [1, L, D]
    x = x_ref[0]                      # [L, C]
    L = x.shape[0]

    # Circular padding=1, kernel_size=3  =>  taps at (t-1) mod L, t, (t+1) mod L.
    # pltpu.roll matches jnp.roll semantics; use positive shifts (L-1 == -1 mod L).
    x_prev = pltpu.roll(x, 1, axis=0)       # x[(t-1) mod L]
    x_next = pltpu.roll(x, L - 1, axis=0)   # x[(t+1) mod L]

    acc = jnp.dot(x_prev, w_ref[0], preferred_element_type=jnp.float32)
    acc = acc + jnp.dot(x, w_ref[1], preferred_element_type=jnp.float32)
    acc = acc + jnp.dot(x_next, w_ref[2], preferred_element_type=jnp.float32)
    o_ref[0] = acc.astype(o_ref.dtype)


def prepare_token_embedding_weight(weight):
    """torch Conv1d weight [d_model, c_in, 3] -> W_eff [3, c_in, d_model]. Do this once."""
    return jnp.transpose(weight, (2, 1, 0))


def token_embedding(x, w_eff):
    """x: [B, L, c_in]; w_eff: [3, c_in, d_model] from prepare_token_embedding_weight."""
    B, L, C = x.shape
    D = w_eff.shape[-1]

    return pl.pallas_call(
        _token_embedding_kernel,
        out_shape=jax.ShapeDtypeStruct((B, L, D), x.dtype),
        grid=(B,),
        in_specs=[
            pl.BlockSpec((1, L, C), lambda b: (b, 0, 0)),
            pl.BlockSpec((3, C, D), lambda b: (0, 0, 0)),   # constant index -> resident weight
        ],
        out_specs=pl.BlockSpec((1, L, D), lambda b: (b, 0, 0)),
        compiler_params=pltpu.CompilerParams(
            dimension_semantics=("parallel",),
        ),
    )(x, w_eff)


def _reference_token_embedding(x, weight):
    """Pure-JAX reference mirroring nn.Conv1d(kernel_size=3, padding=1, circular, bias=False)."""
    x_prev = jnp.roll(x, 1, axis=1)
    x_next = jnp.roll(x, -1, axis=1)
    return (
        jnp.einsum("blc,oc->blo", x_prev, weight[:, :, 0])
        + jnp.einsum("blc,oc->blo", x, weight[:, :, 1])
        + jnp.einsum("blc,oc->blo", x_next, weight[:, :, 2])
    )


if __name__ == "__main__":
    # d_model is a multiple of 128 so the output store path is lane-dense (unmasked vst).
    B, L, c_in, d_model = 2, 8, 4, 128

    key = jax.random.PRNGKey(0)
    kx, kw = jax.random.split(key)

    x = jax.random.normal(kx, (B, L, c_in), dtype=jnp.float32)

    # Kaiming normal, mode='fan_in', nonlinearity='leaky_relu' (negative_slope=0.01):
    #   gain = sqrt(2 / (1 + 0.01^2)), fan_in = c_in * kernel_size, std = gain / sqrt(fan_in)
    fan_in = c_in * 3
    gain = math.sqrt(2.0 / (1.0 + 0.01 ** 2))
    std = gain / math.sqrt(fan_in)
    weight = std * jax.random.normal(kw, (d_model, c_in, 3), dtype=jnp.float32)

    w_eff = prepare_token_embedding_weight(weight)   # once, outside the hot path
    out = jax.block_until_ready(token_embedding(x, w_eff))

    ref = _reference_token_embedding(x, weight)
    assert out.shape == (B, L, d_model)
    assert jnp.allclose(out, ref, atol=1e-5, rtol=1e-5)

    print("KERNEL_OK")
</pallas_src>

<mosaic_0001>
module attributes {stable_mosaic.version = 11 : i64} {
  func.func @_token_embedding_kernel(%arg0: i32, %arg1: memref<1x8x4xf32, #tpu.memory_space<vmem>>, %arg2: memref<3x4x128xf32, #tpu.memory_space<vmem>>, %arg3: memref<1x8x128xf32, #tpu.memory_space<vmem>>) attributes {dimension_semantics = [#tpu.dimension_semantics<parallel>], iteration_bounds = array<i64: 2>, scalar_prefetch = 0 : i64, scratch_operands = 0 : i64, tpu.core_type = #tpu.core_type<tc>, window_params = [{transform_indices = @transform_0, window_bounds = array<i64: 1, 8, 4>}, {pipeline_mode = #tpu.pipeline_mode<synchronous>, transform_indices = @transform_1, window_bounds = array<i64: 3, 4, 128>}, {transform_indices = @transform_2, window_bounds = array<i64: 1, 8, 128>}]} {
    %c0 = arith.constant 0 : index
    %c0_0 = arith.constant 0 : index
    %c0_1 = arith.constant 0 : index
    %0 = vector.load %arg1[%c0, %c0_0, %c0_1] : memref<1x8x4xf32, #tpu.memory_space<vmem>>, vector<1x8x4xf32>
    %1 = vector.shape_cast %0 : vector<1x8x4xf32> to vector<8x4xf32>
    %c1_i32 = arith.constant 1 : i32
    %2 = tpu.dynamic_rotate %1 by %c1_i32 dim 0 : vector<8x4xf32>, i32 -> vector<8x4xf32>
    %c7_i32 = arith.constant 7 : i32
    %3 = tpu.dynamic_rotate %1 by %c7_i32 dim 0 : vector<8x4xf32>, i32 -> vector<8x4xf32>
    %c0_2 = arith.constant 0 : index
    %c0_3 = arith.constant 0 : index
    %c0_4 = arith.constant 0 : index
    %4 = vector.load %arg2[%c0_2, %c0_3, %c0_4] : memref<3x4x128xf32, #tpu.memory_space<vmem>>, vector<1x4x128xf32>
    %5 = vector.shape_cast %4 : vector<1x4x128xf32> to vector<4x128xf32>
    %cst = arith.constant dense<0.000000e+00> : vector<8x128xf32>
    %6 = tpu.matmul %2, %5, %cst {dimension_numbers = #tpu.dot_dimension_numbers<[1], [0], [0], [1], [0, 0, 1, 1], [], []>} : vector<8x4xf32>, vector<4x128xf32>, vector<8x128xf32> -> vector<8x128xf32>
    %c1 = arith.constant 1 : index
    %c0_5 = arith.constant 0 : index
    %c0_6 = arith.constant 0 : index
    %7 = vector.load %arg2[%c1, %c0_5, %c0_6] : memref<3x4x128xf32, #tpu.memory_space<vmem>>, vector<1x4x128xf32>
    %8 = vector.shape_cast %7 : vector<1x4x128xf32> to vector<4x128xf32>
    %cst_7 = arith.constant dense<0.000000e+00> : vector<8x128xf32>
    %9 = tpu.matmul %1, %8, %cst_7 {dimension_numbers = #tpu.dot_dimension_numbers<[1], [0], [0], [1], [0, 0, 1, 1], [], []>} : vector<8x4xf32>, vector<4x128xf32>, vector<8x128xf32> -> vector<8x128xf32>
    %10 = arith.addf %6, %9 : vector<8x128xf32>
    %c2 = arith.constant 2 : index
    %c0_8 = arith.constant 0 : index
    %c0_9 = arith.constant 0 : index
    %11 = vector.load %arg2[%c2, %c0_8, %c0_9] : memref<3x4x128xf32, #tpu.memory_space<vmem>>, vector<1x4x128xf32>
    %12 = vector.shape_cast %11 : vector<1x4x128xf32> to vector<4x128xf32>
    %cst_10 = arith.constant dense<0.000000e+00> : vector<8x128xf32>
    %13 = tpu.matmul %3, %12, %cst_10 {dimension_numbers = #tpu.dot_dimension_numbers<[1], [0], [0], [1], [0, 0, 1, 1], [], []>} : vector<8x4xf32>, vector<4x128xf32>, vector<8x128xf32> -> vector<8x128xf32>
    %14 = arith.addf %10, %13 : vector<8x128xf32>
    %c0_11 = arith.constant 0 : index
    %c0_12 = arith.constant 0 : index
    %c0_13 = arith.constant 0 : index
    %15 = vector.load %arg3[%c0_11, %c0_12, %c0_13] : memref<1x8x128xf32, #tpu.memory_space<vmem>>, vector<1x8x128xf32>
    %16 = vector.shape_cast %15 : vector<1x8x128xf32> to vector<8x128xf32>
    %17 = vector.shape_cast %14 : vector<8x128xf32> to vector<1x8x128xf32>
    tpu.vector_store %arg3[%c0_11, %c0_12, %c0_13], %17 {strides = array<i32>} : memref<1x8x128xf32, #tpu.memory_space<vmem>>, vector<1x8x128xf32>,
    return
  }
  func.func @transform_0(%arg0: i32) -> (i32, i32, i32) {
    %c0_i32 = arith.constant 0 : i32
    %c0_i32_0 = arith.constant 0 : i32
    %c0_i32_1 = arith.constant 0 : i32
    return %arg0, %c0_i32, %c0_i32_0 : i32, i32, i32
  }
  func.func @transform_1(%arg0: i32) -> (i32, i32, i32) {
    %c0_i32 = arith.constant 0 : i32
    %c0_i32_0 = arith.constant 0 : i32
    %c0_i32_1 = arith.constant 0 : i32
    %c0_i32_2 = arith.constant 0 : i32
    return %c0_i32, %c0_i32_0, %c0_i32_1 : i32, i32, i32
  }
  func.func @transform_2(%arg0: i32) -> (i32, i32, i32) {
    %c0_i32 = arith.constant 0 : i32
    %c0_i32_0 = arith.constant 0 : i32
    %c0_i32_1 = arith.constant 0 : i32
    return %arg0, %c0_i32, %c0_i32_0 : i32, i32, i32
  }
}

</mosaic_0001>

<bundles_post_ra>
// kernel: tpu_custom_call.1
= control target key start
LH: loop header
LB: loop body
LE: loop exit
PB: predicated region body
PF: predicated region fallthrough
CT: control target
= control target key end

     0   :  { %7 = vsyncpa [#allocation3], 0  ;;  %s720_s0 = inlined_call_operand.vmem [shape: f32[2,8,4], index: 0, kind: input, shape index: {}]   ;;  %s721_s1 = inlined_call_operand.vmem [shape: f32[3,4,128], index: 1, kind: input, shape index: {}]   ;;  %s722_s2 = inlined_call_operand.hbm [shape: f32[2,8,128], index: 2, kind: output, shape index: {}]  }
   0x1   :  { %9 = vsyncpa [#allocation3 + $0x1], 0  ;;  %s612_s9 = smov 0   ;;  %s614_s10 = smov 0  }
   0x2   :  { %s616_s11 = smov 0   ;;  %s618_s12 = smov 0  }
   0x3 LB: > { %s633_s13 = sadd.s32 4294967295, %s592_s12   ;;  %s452_s14 = sadd.s32 4294967294, %s592_s12   ;;  %s592_s12 = sphi %s618_s12, %s728_s12   ;;  %s588_s11 = sphi %s616_s11, %s727_s11   ;;  %s584_s10 = sphi %s614_s10, %s726_s10   ;;  %s580_s9 = sphi %s612_s9, %s725_s9  }
   0x4   : > { %s637_s15 = sadd.s32 1, %s592_s12   ;;  %s69_s16 = sadd.s32 1, %s588_s11 }
   0x5   : > { %s66_s17 = ssub.s32 %s592_s12, %s637_s15  ;;  %p79_p0 = scmp.ne.s32.totalorder %s588_s11, %s584_s10 }
   0x6   : > { %p67_p1 = scmp.eq.s32.totalorder %s66_s17, 0  ;;  %p80_p2 = scmp.eq.s32.totalorder %s633_s13, 1 }
   0x7   : > { %p85_p3 = scmp.ne.s32.totalorder %s584_s10, %s580_s9  ;;  %p86_p4 = scmp.eq.s32.totalorder %s452_s14, 1 }
   0x8   : > { %s648_s18 = scalar_select %p67_p1, %s588_s11, %s69_s16  }
   0x9   : > { %p650_p5 = por %p80_p2, %p79_p0  ;;  %p654_p6 = por %p86_p4, %p85_p3 }
   0xa   : > { %p455_p7 = scmp.ge.s32.totalorder %s592_s12, 1  ;;  %p114_p8 = scmp.lt.s32.totalorder %s592_s12, 3 }
   0xc   : > { %p115_p9 = pnand %p455_p7, %p114_p8 }
   0xd   : > { %p135_p10 = scmp.lt.s32.totalorder (!%p115_p9), %s633_s13, 1  ;;  %s132_s4 = sand.u32 (!%p115_p9), 1, %s584_s10  }
   0xe   : > { %118 = sbr.rel (%p115_p9) target bundleno = 236 (0xec), region = 28  ;;  %s456_s5 = sshll.u32 (!%p115_p9), %s132_s4, 3 }
   0xf   : > { %s467_s6 = sshll.u32 (!%p115_p9), %s633_s13, 7  ;;  %s134_s7 = scalar_lea.vmem (!%p115_p9), [#allocation2], %s456_s5 }
  0x10   : > { %s393_s8 = sshll.u32 (!%p115_p9), %s134_s7, 4  ;;  %s685_s17 = scalar_lea.hbm (!%p115_p9), %s722_s2, %s467_s6  ;;  %s394_s8 = int_to_ptr.vmem [resolvable:$true] %s393_s8 }
  0x11   : > { %s380_s21 = scalar_lea.sflag (!%p115_p9), [#allocation3], %s132_s4  ;;  %s532_s22 = scalar_lea.vmem (!%p115_p9), %s394_s8, 128 }
  0x12   : > { %p533_p11 = scmp.ne.s32.totalorder (!%p115_p9), %s394_s8, %s532_s22 }
  0x13   : > { %v458_v0 = vld [vmem:[%s721_s1 + $0x4] sm:$0xf]  ;;  %vm149_vm0 = vcmask 1043456   ;;  %v594_v1 = vmov 0.0   ;;  %vm595_vm1 = vmmov 0   ;;  %s136_s25 = scalar_select %p135_p10, %s633_s13, 1 }
  0x14   : > { %476 = vmatprep.subr.mxu0 %v594_v1  ;;  %478 = vmatprep.mubr.msk.f32.mxu0 %vm595_vm1, %v594_v1  ;;  %v142_v2 = vld [vmem:[%s721_s1] sm:$0xf]  ;;  %vm145_vm2 = vcmask 31744   ;;  %v463_v3 = vld [vmem:[%s721_s1 + $0x8] sm:$0xf]  ;;  %p534_p12 = pnand %p533_p11, %p650_p5  ;;  %s596_s13 = smov [#allocation2]  }
  0x15   : > { %477 = vmatpush3.msk.msra.mxu0 %vm149_vm0, %v458_v0  ;;  %481 = vmatprep.subr.mxu1 %v594_v1  ;;  %s457_s26 = sshll.u32 %s136_s25, 3  ;;  %s536_s23 = sshll.u32 %s596_s13, 4  ;;  %s537_s23 = int_to_ptr.vmem [resolvable:$false] %s536_s23 }
  0x16   : > { %486 = vmatprep.subr.mxu0 %v594_v1  ;;  %482 = vmatpush3.msk.msra.mxu1 %vm149_vm0, %v142_v2  ;;  %s138_s29 = scalar_lea.vmem %s720_s0, %s457_s26  ;;  %p535_p13 = pneg %p534_p12 }
  0x17   : > { %483 = vmatprep.mubr.msk.f32.mxu1 %vm595_vm1, %v594_v1  ;;  %v139_v4 = vld [vmem:[%s138_s29] sm:$0xff]  ;;  %s538_s24 = scalar_lea.vmem %s537_s23, 256  ;;  %p539_p0 = scmp.lt.s32.totalorder %s394_s8, %s537_s23 }
  0x18   : > { %v140_v5 = vrot.slane %v139_v4, 7  ;;  %v141_v6 = vrot.slane %v139_v4, 1  ;;  %479 = vmatmul.mubr.msk.f32.vlgmr.msra.gmra.mxu0 %vm145_vm2, %v139_v4  ;;  %p540_p1 = scmp.lt.s32.totalorder %s538_s24, %s532_s22 }
  0x19   : > { %487 = vmatpush3.msk.msra.mxu0 %vm149_vm0, %v463_v3  ;;  %488 = vmatprep.mubr.msk.f32.mxu0 %vm595_vm1, %v594_v1 }
  0x1a   : > { %484 = vmatmul.mubr.msk.f32.vlgmr.msra.gmra.mxu1 %vm145_vm2, %v140_v5  ;;  %p541_p2 = por %p540_p1, %p539_p0 }
  0x1c   : > { %489 = vmatmul.mubr.msk.f32.vlgmr.msra.gmra.mxu0 %vm145_vm2, %v141_v6  ;;  %p542_p3 = pnand %p541_p2, %p535_p13 }
  0xd8   : > { %v219_v7 = vpop.f32.mrf.mxu0 }
  0xda   : > { %v480_v8 = vpop.f32.mrf.mxu0  ;;  %v295_v9 = vpop.f32.mrf.mxu1 }
  0xdb   : > { %v296_v10 = vadd.f32 %v295_v9, %v219_v7 }
  0xdc   : > { %v485_v11 = vpop.f32.mrf.mxu1  ;;  %v373_v12 = vpop.f32.mrf.mxu0 }
  0xdd   : > { %v377_v13 = vadd.f32 %v373_v12, %v296_v10 }
  0xde   : > { %v490_v14 = vpop.f32.mrf.mxu0 }
  0xdf   : > { %378 = vst [vmem:[%s134_s7] sm:$0xff] %v377_v13 }
  0xe0   : > { %545 = shalt.err (!%p542_p3)
}
  0xe1   : > { %s546_s25 = scalar_lea.hbm %s685_s17, 128  ;;  %s550_s28 = scalar_lea.hbm %s722_s2, 256 }
  0xe2   : > { %p547_p4 = scmp.ne.s32.totalorder %s685_s17, %s546_s25  ;;  %p551_p9 = scmp.lt.s32.totalorder %s685_s17, %s722_s2 }
  0xe3   : > { %p552_p10 = scmp.lt.s32.totalorder %s550_s28, %s546_s25 }
  0xe4   : > { %p548_p7 = pnand %p547_p4, %p650_p5 }
  0xe5   : > { %p553_p11 = por %p552_p10, %p551_p9 }
  0xe6   : > { %p549_p8 = pneg %p548_p7 }
  0xe8   : > { %p554_p12 = pnand %p553_p11, %p549_p8 }
  0xea   : > { %557 = shalt.err (!%p554_p12)
}
  0xeb   : > { %491 = dma.vmem_to_hbm [thread:$0]  (%p650_p5), %s394_s8, 128, %s685_s17, %s380_s21  }
  0xec PF: > { %p497_p13 = scmp.ge.s32.totalorder %s592_s12, 2  ;;  %s405_s3 = sand.u32 1, %s580_s9  }
  0xed   : > { %s406_s4 = scalar_lea.sflag [#allocation3], %s405_s3 }
  0xee   : > { %p494_p0 = pnand %p497_p13, %p654_p6 }
  0xf0   : > { %p495_p1 = pneg %p494_p0 }
  0xf2   : > { %575 = dma.done.wait (%p495_p1), %s406_s4, 128  }
  0xf3   : > { %577 = vsyncadd (%p495_p1), %s406_s4, 4294967168  ;;  %p12_p2 = scmp.ge.s32.totalorder %s637_s15, 4   ;;  %s725_s9 = smov %s584_s10 }
  0xf4   : > { %s726_s10 = smov %s588_s11  ;;  %s727_s11 = smov %s648_s18 }
  0xf5   : > { %s728_s12 = smov %s637_s15  ;;  %14 = sbr.rel (!%p12_p2) target bundleno = 3 (0x3), region = 65 }
  0xfa   :  { %411 = vsyncpa [#allocation3], 1 }
  0xfb   :  { %413 = vsyncpa [#allocation3 + $0x1], 1 }

</bundles_post_ra>
